<compile_context>
chip_gen: v7x
topology: tpu7x:2x2x1
jax: 0.10.0
libtpu: 0.0.40
codegen_flags: <defaults>
</compile_context>

<pallas_src>
import jax
import jax.numpy as jnp
from jax.experimental import pallas as pl
from jax.experimental.pallas import tpu as pltpu


def _round_up(x: int, m: int) -> int:
    return ((x + m - 1) // m) * m


def _cdiv(a: int, b: int) -> int:
    return (a + b - 1) // b


def _linear_kernel(x_ref, w_ref, o_ref):
    # x_ref: (tile_b, K), w_ref: (K, tn)  ->  o_ref: (tile_b, tn) f32
    # Canonical (M,K)x(K,N) contraction: weight was pre-transposed at init so
    # the MXU consumes it natively and every load/store is lane-dense.
    o_ref[...] = jnp.dot(
        x_ref[...], w_ref[...], preferred_element_type=jnp.float32
    ).astype(o_ref.dtype)


def _vmem_capacity_bytes() -> int:
    try:
        return int(pltpu.get_tpu_info().vmem_capacity_bytes)
    except Exception:
        return 64 * 1024 * 1024  # conservative fallback (v7x per-TC VMEM)


def _choose_tiles(B, K, n_pad, in_bytes, out_bytes, vmem_budget, want_two_steps):
    """Pick (tile_b, tn) so the double-buffered working set fits vmem_budget.

    Budget counts 2 buffers each for x, W and out blocks (the resident weight
    could be single-buffered via pipeline_mode=pl.Buffered(1); we conservatively
    budget 2x instead of relying on it).
    """
    sub = 8 * max(1, 4 // in_bytes)          # sublane packing: 8 for f32, 16 for bf16
    tn = n_pad                               # prefer the whole padded N resident
    while True:
        w_bytes = 2 * K * tn * in_bytes                   # weight (2 bufs)
        per_row = 2 * (K * in_bytes + tn * out_bytes)     # x + out (2 bufs each)
        max_tb = (vmem_budget - w_bytes) // per_row
        max_tb = (max_tb // sub) * sub
        if max_tb >= sub or tn <= 128:
            break
        tn = max(128, ((tn // 2) // 128) * 128)           # shrink the N tile
    max_tb = max(sub, min(max_tb, 2048))

    # Balanced batch tiles so padding never nearly doubles the DMA/MXU work.
    num_bt = max(1, _cdiv(B, max_tb))
    # Give a 2-TC chip (v7x) at least two parallel grid steps when possible.
    if want_two_steps and num_bt * _cdiv(n_pad, tn) < 2 and B >= 2 * sub:
        num_bt = 2
    tile_b = _round_up(_cdiv(B, num_bt), sub)
    return tile_b, tn


def linear_forward_pallas(x, w_t, out_dim):
    """x: (..., K), w_t: (K, N_pad) pre-transposed/padded weight -> (..., out_dim)."""
    K, n_pad = w_t.shape
    assert x.shape[-1] == K, "feature-dim mismatch"
    assert n_pad % 128 == 0, "weight output dim must be padded to 128 lanes"
    lead = x.shape[:-1]

    x2 = x.reshape(-1, K).astype(w_t.dtype)   # bf16 (or f32) compute dtype
    B = x2.shape[0]

    in_bytes = jnp.dtype(w_t.dtype).itemsize
    out_bytes = jnp.dtype(jnp.float32).itemsize

    # Generation-aware VMEM: ~96 MiB scoped on 128-MiB chips (v5e/v6e),
    # ~48 MiB on v7x (64 MiB physical per TC).
    vmem_cap = _vmem_capacity_bytes()
    vmem_limit = int(min(vmem_cap * 3 // 4, 100 * 1024 * 1024))
    tile_b, tn = _choose_tiles(
        B, K, n_pad, in_bytes, out_bytes,
        vmem_budget=int(vmem_limit * 0.8),
        want_two_steps=(vmem_cap <= 64 * 1024 * 1024),   # heuristic: v7x
    )
    grid = (_cdiv(B, tile_b), _cdiv(n_pad, tn))

    # TODO(synk): add a K-tiling ("arbitrary") grid axis with an f32 VMEM
    # accumulator + pl.when init/finalize if K itself ever exceeds the budget.
    out = pl.pallas_call(
        _linear_kernel,
        out_shape=jax.ShapeDtypeStruct((B, n_pad), jnp.float32),
        grid_spec=pltpu.PrefetchScalarGridSpec(
            num_scalar_prefetch=0,
            grid=grid,
            in_specs=[
                # x tiled along batch; K is the full array dim.
                pl.BlockSpec((tile_b, K), lambda i, j: (i, 0)),
                # Pre-transposed weight: (K, tn) block, resident across batch tiles.
                pl.BlockSpec((K, tn), lambda i, j: (0, j)),
            ],
            out_specs=pl.BlockSpec((tile_b, tn), lambda i, j: (i, j)),
        ),
        compiler_params=pltpu.CompilerParams(
            # Both axes independent -> "parallel" (v7x 2-TC sharding; no-op v5e/v6e).
            dimension_semantics=("parallel", "parallel"),
            vmem_limit_bytes=vmem_limit,
        ),
        cost_estimate=pl.CostEstimate(
            flops=2 * B * n_pad * K,
            bytes_accessed=in_bytes * (B * K + K * n_pad) + out_bytes * B * n_pad,
            transcendentals=0,
        ),
    )(x2, w_t)

    # Strip lane padding (batch needs no stripping: out_shape is already (B, n_pad)).
    return out[:, :out_dim].reshape(*lead, out_dim)


class PallasLinearRegression:
    """forward(x) = x @ W.T, matching torch.nn.Linear(in, out, bias=False)."""

    def __init__(self, w, *, use_bf16=True):
        self.out_dim, self.in_dim = w.shape
        n_pad = _round_up(self.out_dim, 128)
        compute_dtype = jnp.bfloat16 if use_bf16 else w.dtype
        # One-time at init: pad the output dim to 128 lanes, transpose to
        # (K, N_pad), cast to the compute dtype. Lane axis is now N_pad, so
        # weight DMAs / loads are full-width and the kernel contraction is in
        # native MXU orientation; bf16 halves HBM bytes (accumulation stays f32).
        self.w_t = (
            jnp.pad(w, ((0, n_pad - self.out_dim), (0, 0))).T.astype(compute_dtype)
        )

    def __call__(self, x):
        return linear_forward_pallas(x, self.w_t, self.out_dim)


if __name__ == "__main__":
    # Small shapes consistent with the module's forward.
    batch, input_size, output_size = 8, 32, 16

    key = jax.random.PRNGKey(0)
    kx, kw = jax.random.split(key)

    x = jax.random.normal(kx, (batch, input_size), dtype=jnp.float32)
    # Deterministic init mimicking torch.nn.Linear default: U(-1/sqrt(in), 1/sqrt(in)).
    bound = 1.0 / (input_size ** 0.5)
    w = jax.random.uniform(
        kw, (output_size, input_size), dtype=jnp.float32, minval=-bound, maxval=bound
    )

    model = PallasLinearRegression(w)          # bf16 inputs, f32 accumulation
    out = jax.block_until_ready(model(x))

    # Sanity check against plain f32 JAX reference (tolerances relaxed for bf16 inputs).
    ref = x @ w.T
    assert out.shape == (batch, output_size)
    assert out.dtype == jnp.float32
    assert jnp.allclose(out, ref, atol=5e-2, rtol=5e-2), float(
        jnp.max(jnp.abs(out - ref))
    )

    print("KERNEL_OK")
</pallas_src>

<mosaic_0001>
module attributes {stable_mosaic.version = 11 : i64} {
  func.func @_linear_kernel(%arg0: i32, %arg1: i32, %arg2: memref<16x32xbf16, #tpu.memory_space<vmem>>, %arg3: memref<32x128xbf16, #tpu.memory_space<vmem>>, %arg4: memref<16x128xf32, #tpu.memory_space<vmem>>) attributes {dimension_semantics = [#tpu.dimension_semantics<parallel>, #tpu.dimension_semantics<parallel>], iteration_bounds = array<i64: 1, 1>, scalar_prefetch = 0 : i64, scratch_operands = 0 : i64, tpu.core_type = #tpu.core_type<tc>, window_params = [{transform_indices = @transform_0, window_bounds = array<i64: 16, 32>}, {transform_indices = @transform_1, window_bounds = array<i64: 32, 128>}, {transform_indices = @transform_2, window_bounds = array<i64: 16, 128>}]} {
    %c0 = arith.constant 0 : index
    %c0_0 = arith.constant 0 : index
    %0 = vector.load %arg2[%c0, %c0_0] : memref<16x32xbf16, #tpu.memory_space<vmem>>, vector<16x32xbf16>
    %c0_1 = arith.constant 0 : index
    %c0_2 = arith.constant 0 : index
    %1 = vector.load %arg3[%c0_1, %c0_2] : memref<32x128xbf16, #tpu.memory_space<vmem>>, vector<32x128xbf16>
    %cst = arith.constant dense<0.000000e+00> : vector<16x128xf32>
    %2 = tpu.matmul %0, %1, %cst {dimension_numbers = #tpu.dot_dimension_numbers<[1], [0], [0], [1], [0, 0, 1, 1], [], []>} : vector<16x32xbf16>, vector<32x128xbf16>, vector<16x128xf32> -> vector<16x128xf32>
    %c0_3 = arith.constant 0 : index
    %c0_4 = arith.constant 0 : index
    %3 = vector.load %arg4[%c0_3, %c0_4] : memref<16x128xf32, #tpu.memory_space<vmem>>, vector<16x128xf32>
    tpu.vector_store %arg4[%c0_3, %c0_4], %2 {strides = array<i32>} : memref<16x128xf32, #tpu.memory_space<vmem>>, vector<16x128xf32>,
    return
  }
  func.func @transform_0(%arg0: i32, %arg1: i32) -> (i32, i32) {
    %c0_i32 = arith.constant 0 : i32
    %c0_i32_0 = arith.constant 0 : i32
    return %arg0, %c0_i32 : i32, i32
  }
  func.func @transform_1(%arg0: i32, %arg1: i32) -> (i32, i32) {
    %c0_i32 = arith.constant 0 : i32
    %c0_i32_0 = arith.constant 0 : i32
    return %c0_i32, %arg1 : i32, i32
  }
  func.func @transform_2(%arg0: i32, %arg1: i32) -> (i32, i32) {
    %c0_i32 = arith.constant 0 : i32
    return %arg0, %arg1 : i32, i32
  }
}

</mosaic_0001>

<bundles_post_ra>
// kernel: tpu_custom_call.1
= control target key start
LH: loop header
LB: loop body
LE: loop exit
PB: predicated region body
PF: predicated region fallthrough
CT: control target
= control target key end

     0   :  { %7 = vsyncpa [#allocation3], 0  ;;  %s288_s0 = inlined_call_operand.hbm [shape: bf16[8,32], index: 0, kind: input, shape index: {}]   ;;  %s289_s1 = inlined_call_operand.hbm [shape: bf16[32,128], index: 1, kind: input, shape index: {}]   ;;  %s290_s2 = inlined_call_operand.hbm [shape: f32[8,128], index: 2, kind: output, shape index: {}]  }
   0x1   :  { %8 = vsyncpa [#allocation6], 0 }
   0x2   :  { %9 = vsyncpa [#allocation4], 0 }
   0x3   :  { %14 = vsyncadd [#allocation3], 64  ;;  %s228_s9 = smov [#allocation2]   ;;  %s156_s13 = scalar_lea.hbm %s288_s0, 64 }
   0x4   :  { %s15_s10 = sshll.u32 %s228_s9, 4  ;;  %p157_p0 = scmp.ne.s32.totalorder %s288_s0, %s156_s13  ;;  %s16_s10 = int_to_ptr.vmem [resolvable:$true] %s15_s10 }
   0x5   :  { %p160_p1 = scmp.lt.u32.totalorder %s156_s13, %s288_s0 }
   0x7   :  { %p162_p2 = pnand %p160_p1, %p157_p0 }
   0x9   :  { %165 = shalt.err (!%p162_p2)
}
   0xa   :  { %s166_s18 = scalar_lea.vmem %s16_s10, 64  ;;  %s170_s19 = scalar_lea.vmem %s16_s10, 128 }
   0xb   :  { %p167_p3 = scmp.ne.s32.totalorder %s16_s10, %s166_s18  ;;  %p171_p4 = scmp.lt.s32.totalorder %s16_s10, %s16_s10 }
   0xc   :  { %p172_p5 = scmp.lt.s32.totalorder %s170_s19, %s166_s18 }
   0xe   :  { %p173_p6 = por %p172_p5, %p171_p4 }
  0x10   :  { %p174_p7 = pnand %p173_p6, %p167_p3 }
  0x12   :  { %177 = shalt.err (!%p174_p7)
}
  0x13   :  { %s229_s20 = smov 64   ;;  %s230_s21 = smov 4  }
  0x14   :  { %21 = dma.hbm_to_vmem [thread:$0]  %s288_s0, 64, %s16_s10, [#allocation3], %s229_s20, %s229_s20, %s230_s21  }
  0x15   :  { %s231_s24 = smov [#allocation5]   ;;  %s178_s28 = scalar_lea.hbm %s289_s1, 256 }
  0x16   :  { %s27_s25 = sshll.u32 %s231_s24, 4  ;;  %p179_p8 = scmp.ne.s32.totalorder %s289_s1, %s178_s28  ;;  %s28_s25 = int_to_ptr.vmem [resolvable:$true] %s27_s25 }
  0x17   :  { %p182_p9 = scmp.lt.u32.totalorder %s178_s28, %s289_s1 }
  0x19   :  { %p184_p10 = pnand %p182_p9, %p179_p8 }
  0x1b   :  { %187 = shalt.err (!%p184_p10)
}
  0x1c   :  { %s188_s5 = scalar_lea.vmem %s28_s25, 256  ;;  %p193_p12 = scmp.lt.s32.totalorder %s28_s25, %s28_s25 }
  0x1d   :  { %p189_p11 = scmp.ne.s32.totalorder %s28_s25, %s188_s5  ;;  %p194_p13 = scmp.lt.s32.totalorder %s188_s5, %s188_s5 }
  0x1f   :  { %p195_p0 = por %p194_p13, %p193_p12 }
  0x21   :  { %p196_p1 = pnand %p195_p0, %p189_p11 }
  0x23   :  { %199 = shalt.err (!%p196_p1)
}
  0x24   :  { %33 = dma.hbm_to_vmem [thread:$0]  %s289_s1, 256, %s28_s25, [#allocation6], %s229_s20, %s229_s20, %s230_s21  }
  0x25   :  { %222 = dma.done.wait [#allocation3], 128  }
  0x26   :  { %223 = vsyncadd [#allocation3], 4294967168 }
  0x27   :  { %224 = dma.done.wait [#allocation6], 256  }
  0x28   :  { %225 = vsyncadd [#allocation6], 4294967040  ;;  %v232_v0 = vmov 0.0   ;;  %vm233_vm0 = vmmov 0   ;;  %v153_v1 = vld [vmem:[#allocation5] sm:$0xff]   ;;  %v154_v2 = vld [vmem:[#allocation5 + $0x8] sm:$0xff]  }
  0x29   :  { %136 = vmatprep.subr.bf16.mxu0 %v232_v0  ;;  %140 = vmatprep.mubr.msk.bf16.mxu0 %vm233_vm0, %v232_v0  ;;  %v155_v3 = vld [vmem:[#allocation2] sm:$0xff]   ;;  %vm64_vm1 = vcmask 261120  }
  0x2a   :  { %137 = vmatpush3.bf16.msra.mxu0 %v153_v1 }
  0x2b   :  { %138 = vmatprep.subr.bf16.mxu0 %v232_v0 }
  0x2e   :  { %139 = vmatpush3.bf16.msra.mxu0 %v154_v2 }
  0x31   :  { %141 = vmatmul.mubr.msk.bf16.vlgmr.msra.gmra.mrb[0].mxu0 %vm64_vm1, %v155_v3 }
 0x104   :  { %v102_v4 = vpop.f32.mrb[0].mxu0 }
 0x105   :  { %109 = vst [vmem:[#allocation7] sm:$0xff] %v102_v4  ;;  %v142_v5 = vpop.f32.mrb[1].mxu0 }
 0x106   :  { %v105_v6 = vpop.f32.mrb[2].mxu0 }
 0x107   :  { %110 = vst [vmem:[#allocation7 + $0x8] sm:$0xff] %v105_v6  ;;  %v143_v7 = vpop.f32.mrb[3].mxu0 }
 0x108   :  { %115 = vsyncadd [#allocation4], 128  ;;  %s234_s1 = smov [#allocation7]  }
 0x109   :  { %s116_s7 = sshll.u32 %s234_s1, 4  ;;  %s117_s7 = int_to_ptr.vmem [resolvable:$true] %s116_s7 }
 0x10a   :  { %s200_s8 = scalar_lea.vmem %s117_s7, 128  ;;  %s204_s9 = scalar_lea.vmem %s117_s7, 256 }
 0x10b   :  { %p201_p2 = scmp.ne.s32.totalorder %s117_s7, %s200_s8  ;;  %p205_p3 = scmp.lt.s32.totalorder %s117_s7, %s117_s7 }
 0x10c   :  { %p206_p4 = scmp.lt.s32.totalorder %s204_s9, %s200_s8 }
 0x10e   :  { %p207_p5 = por %p206_p4, %p205_p3 }
 0x110   :  { %p208_p6 = pnand %p207_p5, %p201_p2 }
 0x112   :  { %211 = shalt.err (!%p208_p6)
}
 0x113   :  { %s212_s12 = scalar_lea.hbm %s290_s2, 128 }
 0x114   :  { %p213_p7 = scmp.ne.s32.totalorder %s290_s2, %s212_s12  ;;  %p216_p8 = scmp.lt.u32.totalorder %s212_s12, %s290_s2 }
 0x116   :  { %p218_p9 = pnand %p216_p8, %p213_p7 }
 0x118   :  { %221 = shalt.err (!%p218_p9)
}
 0x119   :  { %s235_s17 = smov 128   ;;  %s236_s18 = smov 8  }
 0x11a   :  { %122 = dma.vmem_to_hbm [thread:$0]  %s117_s7, 128, %s290_s2, [#allocation4], %s235_s17, %s235_s17, %s236_s18  }
 0x11b   :  { %226 = dma.done.wait [#allocation4], 256  }
 0x11c   :  { %227 = vsyncadd [#allocation4], 4294967040 }
 0x11d   :  { %126 = vsyncpa [#allocation3], 1 }
 0x11e   :  { %127 = vsyncpa [#allocation6], 1 }
 0x11f   :  { %128 = vsyncpa [#allocation4], 1 }

</bundles_post_ra>
